<compile_context>
chip_gen: v6e
topology: v6e:2x2x1
jax: 0.10.0
libtpu: 0.0.40
codegen_flags: <defaults>
</compile_context>

<pallas_src>
import math

import jax
import jax.numpy as jnp
from jax.experimental import pallas as pl
from jax.experimental.pallas import tpu as pltpu


def _round_up(n, m):
    return ((n + m - 1) // m) * m


def _pad2d(a, rows, cols):
    r, c = a.shape
    return jnp.pad(a, ((0, rows - r), (0, cols - c)))


def _denoising_kernel(x_ref, z_ref, w1x_ref, w1z_ref, b1_ref,
                      w2_ref, b2_ref, w3_ref, b3_ref, out_ref):
    # fc1 on the concatenated [x, z] input, expressed as two bf16 MXU matmuls
    # with f32 accumulation:  [x | z] @ W1 == x @ W1x + z @ W1z.
    h = jnp.dot(x_ref[...], w1x_ref[...], preferred_element_type=jnp.float32)
    h = h + jnp.dot(z_ref[...], w1z_ref[...], preferred_element_type=jnp.float32)
    h = jnp.maximum(h + b1_ref[...], 0.0)                       # relu(fc1), f32

    h = jnp.dot(h.astype(jnp.bfloat16), w2_ref[...],
                preferred_element_type=jnp.float32)
    h = jnp.maximum(h + b2_ref[...], 0.0)                       # relu(fc2), f32

    o = jnp.dot(h.astype(jnp.bfloat16), w3_ref[...],
                preferred_element_type=jnp.float32)
    out_ref[...] = jnp.tanh(o + b3_ref[...]).astype(out_ref.dtype)  # tanh(fc3)


def denoising_net_forward(z_prev, x, w1, b1, w2, b2, w3, b3):
    """Pallas equivalent of DenoisingNet.forward(z_prev, x).

    Weights are stored in (in_features, out_features) layout, i.e. already
    transposed relative to torch.nn.Linear.weight.
    """
    f32, bf16 = jnp.float32, jnp.bfloat16

    B = x.shape[0]
    x_flat = x.reshape(B, -1).astype(f32)
    z_flat = z_prev.reshape(B, -1).astype(f32)
    I = x_flat.shape[1]
    assert z_flat.shape[1] == I, "x and z_prev must flatten to the same width"
    assert w1.shape[0] == 2 * I
    H = w1.shape[1]
    O = w3.shape[1]

    # I is a contraction dim only -> pad to the bf16 sublane pack (16).
    # H / O feed lane-dense intermediates / outputs -> pad to 128.
    Ip = _round_up(I, 16)
    Hp = _round_up(H, 128)
    Op = _round_up(O, 128)

    # Batch tiling: large tiles for streaming efficiency, >= 2 grid steps once
    # B >= 256 (so v7x's 2nd TensorCore gets work), tail-tight TB.
    if B < 256:
        n_steps = 1
    else:
        n_steps = max(2, pl.cdiv(B, 512))
    TB = _round_up(pl.cdiv(B, n_steps), 16)     # 16 = bf16 sublane pack
    Bp = TB * n_steps
    grid = (n_steps,)

    # Padded, dtype-cast operands (zero pad => relu(0)=0 / tanh(0)=0 exact).
    x_p = _pad2d(x_flat, Bp, Ip).astype(bf16)
    z_p = _pad2d(z_flat, Bp, Ip).astype(bf16)
    w1x_p = _pad2d(w1[:I].astype(f32), Ip, Hp).astype(bf16)   # rows multiplying x
    w1z_p = _pad2d(w1[I:].astype(f32), Ip, Hp).astype(bf16)   # rows multiplying z
    w2_p = _pad2d(w2.astype(f32), Hp, Hp).astype(bf16)
    w3_p = _pad2d(w3.astype(f32), Hp, Op).astype(bf16)
    b1_p = _pad2d(b1.reshape(1, H).astype(f32), 1, Hp)        # biases stay f32
    b2_p = _pad2d(b2.reshape(1, H).astype(f32), 1, Hp)
    b3_p = _pad2d(b3.reshape(1, O).astype(f32), 1, Op)

    # Explicit scoped-VMEM budget: resident weights (assume worst-case 2 bufs)
    # + double-buffered streaming tiles + in-kernel f32 intermediates + headroom.
    weight_bytes = 2 * (2 * Ip * Hp + Hp * Hp + Hp * Op)           # bf16 weights
    bias_bytes = 4 * (2 * Hp + Op)
    stream_bytes = 2 * (2 * TB * Ip * 2 + TB * Op * 4)             # x, z, out tiles
    interm_bytes = 2 * TB * Hp * 4
    vmem_limit = 2 * (weight_bytes + bias_bytes) + stream_bytes + interm_bytes
    vmem_limit = min(max(vmem_limit + (4 << 20), 32 << 20), 100 << 20)

    args = (x_p, z_p, w1x_p, w1z_p, b1_p, w2_p, b2_p, w3_p, b3_p)

    def run(single_buffer_weights):
        const_kwargs = {}
        if single_buffer_weights:
            const_kwargs = dict(pipeline_mode=pl.Buffered(1))

        def batch_spec(shape):
            return pl.BlockSpec(shape, lambda i: (i, 0))

        def const_spec(shape):
            # Constant index_map -> DMA'd once, resident across grid steps.
            return pl.BlockSpec(shape, lambda i: (0, 0), **const_kwargs)

        return pl.pallas_call(
            _denoising_kernel,
            out_shape=jax.ShapeDtypeStruct((Bp, Op), f32),
            grid=grid,
            in_specs=[
                batch_spec((TB, Ip)),      # x tile   (bf16, streamed)
                batch_spec((TB, Ip)),      # z tile   (bf16, streamed)
                const_spec((Ip, Hp)),      # W1x      (bf16, resident)
                const_spec((Ip, Hp)),      # W1z
                const_spec((1, Hp)),       # b1 (f32)
                const_spec((Hp, Hp)),      # W2
                const_spec((1, Hp)),       # b2
                const_spec((Hp, Op)),      # W3
                const_spec((1, Op)),       # b3
            ],
            out_specs=pl.BlockSpec((TB, Op), lambda i: (i, 0)),
            compiler_params=pltpu.CompilerParams(
                dimension_semantics=("parallel",),
                vmem_limit_bytes=int(vmem_limit)),
        )(*args)

    if hasattr(pl, "Buffered"):
        try:
            out_p = run(True)
        except Exception:
            # Fallback for jax versions that reject single-buffered pipeline_mode.
            out_p = run(False)
    else:
        out_p = run(False)

    return out_p[:B, :O]


def _reference(z_prev, x, w1, b1, w2, b2, w3, b3):
    B = x.shape[0]
    xf = x.reshape(B, -1)
    zf = z_prev.reshape(B, -1)
    comb = jnp.concatenate([xf, zf], axis=1)
    h = jax.nn.relu(comb @ w1 + b1)
    h = jax.nn.relu(h @ w2 + b2)
    return jnp.tanh(h @ w3 + b3)


if __name__ == "__main__":
    hidden_dim = 10
    input_dim = 4 * 4                    # .view(B, -1) -> 16 features

    key = jax.random.PRNGKey(0)
    ks = jax.random.split(key, 10)

    def linear_init(kw, kb, fan_in, fan_out):
        # Deterministic stand-in for nn.Linear's default U(-1/sqrt(fan_in), ...) init.
        bound = 1.0 / math.sqrt(fan_in)
        w = jax.random.uniform(kw, (fan_in, fan_out), dtype=jnp.float32,
                               minval=-bound, maxval=bound)
        b = jax.random.uniform(kb, (fan_out,), dtype=jnp.float32,
                               minval=-bound, maxval=bound)
        return w, b

    w1, b1 = linear_init(ks[0], ks[1], 2 * input_dim, hidden_dim)
    w2, b2 = linear_init(ks[2], ks[3], hidden_dim, hidden_dim)
    w3, b3 = linear_init(ks[4], ks[5], hidden_dim, input_dim)

    # Case 1: demo-sized batch (single grid step).
    batch = 8
    x = jax.random.normal(ks[6], (batch, 4, 4), dtype=jnp.float32)
    z_prev = jax.random.normal(ks[7], (batch, 4, 4), dtype=jnp.float32)
    out = jax.block_until_ready(
        denoising_net_forward(z_prev, x, w1, b1, w2, b2, w3, b3))
    ref = _reference(z_prev, x, w1, b1, w2, b2, w3, b3)
    assert out.shape == (batch, input_dim)
    # bf16 MXU operands (f32 accumulation) -> loosened tolerance vs f32 reference.
    assert jnp.allclose(out, ref, atol=3e-2, rtol=3e-2), "mismatch (small batch)"

    # Case 2: larger batch exercising the multi-step parallel grid + tail padding.
    batch2 = 300
    x2 = jax.random.normal(ks[8], (batch2, 4, 4), dtype=jnp.float32)
    z2 = jax.random.normal(ks[9], (batch2, 4, 4), dtype=jnp.float32)
    out2 = jax.block_until_ready(
        denoising_net_forward(z2, x2, w1, b1, w2, b2, w3, b3))
    ref2 = _reference(z2, x2, w1, b1, w2, b2, w3, b3)
    assert out2.shape == (batch2, input_dim)
    assert jnp.allclose(out2, ref2, atol=3e-2, rtol=3e-2), "mismatch (large batch)"

    print("KERNEL_OK")
</pallas_src>

<mosaic_0001>
module attributes {stable_mosaic.version = 11 : i64} {
  func.func @_denoising_kernel(%arg0: i32, %arg1: memref<16x16xbf16, #tpu.memory_space<vmem>>, %arg2: memref<16x16xbf16, #tpu.memory_space<vmem>>, %arg3: memref<16x128xbf16, #tpu.memory_space<vmem>>, %arg4: memref<16x128xbf16, #tpu.memory_space<vmem>>, %arg5: memref<1x128xf32, #tpu.memory_space<vmem>>, %arg6: memref<128x128xbf16, #tpu.memory_space<vmem>>, %arg7: memref<1x128xf32, #tpu.memory_space<vmem>>, %arg8: memref<128x128xbf16, #tpu.memory_space<vmem>>, %arg9: memref<1x128xf32, #tpu.memory_space<vmem>>, %arg10: memref<16x128xf32, #tpu.memory_space<vmem>>) attributes {dimension_semantics = [#tpu.dimension_semantics<parallel>], iteration_bounds = array<i64: 1>, scalar_prefetch = 0 : i64, scratch_operands = 0 : i64, tpu.core_type = #tpu.core_type<tc>, window_params = [{transform_indices = @transform_0, window_bounds = array<i64: 16, 16>}, {transform_indices = @transform_1, window_bounds = array<i64: 16, 16>}, {pipeline_mode = #tpu.pipeline_mode<synchronous>, transform_indices = @transform_2, window_bounds = array<i64: 16, 128>}, {pipeline_mode = #tpu.pipeline_mode<synchronous>, transform_indices = @transform_3, window_bounds = array<i64: 16, 128>}, {pipeline_mode = #tpu.pipeline_mode<synchronous>, transform_indices = @transform_4, window_bounds = array<i64: 1, 128>}, {pipeline_mode = #tpu.pipeline_mode<synchronous>, transform_indices = @transform_5, window_bounds = array<i64: 128, 128>}, {pipeline_mode = #tpu.pipeline_mode<synchronous>, transform_indices = @transform_6, window_bounds = array<i64: 1, 128>}, {pipeline_mode = #tpu.pipeline_mode<synchronous>, transform_indices = @transform_7, window_bounds = array<i64: 128, 128>}, {pipeline_mode = #tpu.pipeline_mode<synchronous>, transform_indices = @transform_8, window_bounds = array<i64: 1, 128>}, {transform_indices = @transform_9, window_bounds = array<i64: 16, 128>}]} {
    %c0 = arith.constant 0 : index
    %c0_0 = arith.constant 0 : index
    %0 = vector.load %arg1[%c0, %c0_0] : memref<16x16xbf16, #tpu.memory_space<vmem>>, vector<16x16xbf16>
    %c0_1 = arith.constant 0 : index
    %c0_2 = arith.constant 0 : index
    %1 = vector.load %arg3[%c0_1, %c0_2] : memref<16x128xbf16, #tpu.memory_space<vmem>>, vector<16x128xbf16>
    %cst = arith.constant dense<0.000000e+00> : vector<16x128xf32>
    %2 = tpu.matmul %0, %1, %cst {dimension_numbers = #tpu.dot_dimension_numbers<[1], [0], [0], [1], [0, 0, 1, 1], [], []>} : vector<16x16xbf16>, vector<16x128xbf16>, vector<16x128xf32> -> vector<16x128xf32>
    %c0_3 = arith.constant 0 : index
    %c0_4 = arith.constant 0 : index
    %3 = vector.load %arg2[%c0_3, %c0_4] : memref<16x16xbf16, #tpu.memory_space<vmem>>, vector<16x16xbf16>
    %c0_5 = arith.constant 0 : index
    %c0_6 = arith.constant 0 : index
    %4 = vector.load %arg4[%c0_5, %c0_6] : memref<16x128xbf16, #tpu.memory_space<vmem>>, vector<16x128xbf16>
    %cst_7 = arith.constant dense<0.000000e+00> : vector<16x128xf32>
    %5 = tpu.matmul %3, %4, %cst_7 {dimension_numbers = #tpu.dot_dimension_numbers<[1], [0], [0], [1], [0, 0, 1, 1], [], []>} : vector<16x16xbf16>, vector<16x128xbf16>, vector<16x128xf32> -> vector<16x128xf32>
    %6 = arith.addf %2, %5 : vector<16x128xf32>
    %c0_8 = arith.constant 0 : index
    %c0_9 = arith.constant 0 : index
    %7 = vector.load %arg5[%c0_8, %c0_9] : memref<1x128xf32, #tpu.memory_space<vmem>>, vector<1x128xf32>
    %8 = vector.broadcast %7 : vector<1x128xf32> to vector<16x128xf32>
    %9 = arith.addf %6, %8 : vector<16x128xf32>
    %cst_10 = arith.constant 0.000000e+00 : f32
    %10 = vector.broadcast %cst_10 : f32 to vector<16x128xf32>
    %11 = arith.maximumf %9, %10 : vector<16x128xf32>
    %12 = arith.truncf %11 : vector<16x128xf32> to vector<16x128xbf16>
    %c0_11 = arith.constant 0 : index
    %c0_12 = arith.constant 0 : index
    %13 = vector.load %arg6[%c0_11, %c0_12] : memref<128x128xbf16, #tpu.memory_space<vmem>>, vector<128x128xbf16>
    %cst_13 = arith.constant dense<0.000000e+00> : vector<16x128xf32>
    %14 = tpu.matmul %12, %13, %cst_13 {dimension_numbers = #tpu.dot_dimension_numbers<[1], [0], [0], [1], [0, 0, 1, 1], [], []>} : vector<16x128xbf16>, vector<128x128xbf16>, vector<16x128xf32> -> vector<16x128xf32>
    %c0_14 = arith.constant 0 : index
    %c0_15 = arith.constant 0 : index
    %15 = vector.load %arg7[%c0_14, %c0_15] : memref<1x128xf32, #tpu.memory_space<vmem>>, vector<1x128xf32>
    %16 = vector.broadcast %15 : vector<1x128xf32> to vector<16x128xf32>
    %17 = arith.addf %14, %16 : vector<16x128xf32>
    %cst_16 = arith.constant 0.000000e+00 : f32
    %18 = vector.broadcast %cst_16 : f32 to vector<16x128xf32>
    %19 = arith.maximumf %17, %18 : vector<16x128xf32>
    %20 = arith.truncf %19 : vector<16x128xf32> to vector<16x128xbf16>
    %c0_17 = arith.constant 0 : index
    %c0_18 = arith.constant 0 : index
    %21 = vector.load %arg8[%c0_17, %c0_18] : memref<128x128xbf16, #tpu.memory_space<vmem>>, vector<128x128xbf16>
    %cst_19 = arith.constant dense<0.000000e+00> : vector<16x128xf32>
    %22 = tpu.matmul %20, %21, %cst_19 {dimension_numbers = #tpu.dot_dimension_numbers<[1], [0], [0], [1], [0, 0, 1, 1], [], []>} : vector<16x128xbf16>, vector<128x128xbf16>, vector<16x128xf32> -> vector<16x128xf32>
    %c0_20 = arith.constant 0 : index
    %c0_21 = arith.constant 0 : index
    %23 = vector.load %arg9[%c0_20, %c0_21] : memref<1x128xf32, #tpu.memory_space<vmem>>, vector<1x128xf32>
    %24 = vector.broadcast %23 : vector<1x128xf32> to vector<16x128xf32>
    %25 = arith.addf %22, %24 : vector<16x128xf32>
    %26 = math.tanh %25 : vector<16x128xf32>
    %c0_22 = arith.constant 0 : index
    %c0_23 = arith.constant 0 : index
    %27 = vector.load %arg10[%c0_22, %c0_23] : memref<16x128xf32, #tpu.memory_space<vmem>>, vector<16x128xf32>
    tpu.vector_store %arg10[%c0_22, %c0_23], %26 {strides = array<i32>} : memref<16x128xf32, #tpu.memory_space<vmem>>, vector<16x128xf32>,
    return
  }
  func.func @transform_0(%arg0: i32) -> (i32, i32) {
    %c0_i32 = arith.constant 0 : i32
    %c0_i32_0 = arith.constant 0 : i32
    return %arg0, %c0_i32 : i32, i32
  }
  func.func @transform_1(%arg0: i32) -> (i32, i32) {
    %c0_i32 = arith.constant 0 : i32
    %c0_i32_0 = arith.constant 0 : i32
    return %arg0, %c0_i32 : i32, i32
  }
  func.func @transform_2(%arg0: i32) -> (i32, i32) {
    %c0_i32 = arith.constant 0 : i32
    %c0_i32_0 = arith.constant 0 : i32
    %c0_i32_1 = arith.constant 0 : i32
    return %c0_i32, %c0_i32_0 : i32, i32
  }
  func.func @transform_3(%arg0: i32) -> (i32, i32) {
    %c0_i32 = arith.constant 0 : i32
    %c0_i32_0 = arith.constant 0 : i32
    %c0_i32_1 = arith.constant 0 : i32
    return %c0_i32, %c0_i32_0 : i32, i32
  }
  func.func @transform_4(%arg0: i32) -> (i32, i32) {
    %c0_i32 = arith.constant 0 : i32
    %c0_i32_0 = arith.constant 0 : i32
    %c0_i32_1 = arith.constant 0 : i32
    return %c0_i32, %c0_i32_0 : i32, i32
  }
  func.func @transform_5(%arg0: i32) -> (i32, i32) {
    %c0_i32 = arith.constant 0 : i32
    %c0_i32_0 = arith.constant 0 : i32
    %c0_i32_1 = arith.constant 0 : i32
    return %c0_i32, %c0_i32_0 : i32, i32
  }
  func.func @transform_6(%arg0: i32) -> (i32, i32) {
    %c0_i32 = arith.constant 0 : i32
    %c0_i32_0 = arith.constant 0 : i32
    %c0_i32_1 = arith.constant 0 : i32
    return %c0_i32, %c0_i32_0 : i32, i32
  }
  func.func @transform_7(%arg0: i32) -> (i32, i32) {
    %c0_i32 = arith.constant 0 : i32
    %c0_i32_0 = arith.constant 0 : i32
    %c0_i32_1 = arith.constant 0 : i32
    return %c0_i32, %c0_i32_0 : i32, i32
  }
  func.func @transform_8(%arg0: i32) -> (i32, i32) {
    %c0_i32 = arith.constant 0 : i32
    %c0_i32_0 = arith.constant 0 : i32
    %c0_i32_1 = arith.constant 0 : i32
    return %c0_i32, %c0_i32_0 : i32, i32
  }
  func.func @transform_9(%arg0: i32) -> (i32, i32) {
    %c0_i32 = arith.constant 0 : i32
    %c0_i32_0 = arith.constant 0 : i32
    return %arg0, %c0_i32 : i32, i32
  }
}

module attributes {stable_mosaic.version = 11 : i64} {
  func.func @_denoising_kernel(%arg0: i32, %arg1: memref<16x16xbf16, #tpu.memory_space<vmem>>, %arg2: memref<16x16xbf16, #tpu.memory_space<vmem>>, %arg3: memref<16x128xbf16, #tpu.memory_space<vmem>>, %arg4: memref<16x128xbf16, #tpu.memory_space<vmem>>, %arg5: memref<1x128xf32, #tpu.memory_space<vmem>>, %arg6: memref<128x128xbf16, #tpu.memory_space<vmem>>, %arg7: memref<1x128xf32, #tpu.memory_space<vmem>>, %arg8: memref<128x128xbf16, #tpu.memory_space<vmem>>, %arg9: memref<1x128xf32, #tpu.memory_space<vmem>>, %arg10: memref<16x128xf32, #tpu.memory_space<vmem>>) attributes {dimension_semantics = [#tpu.dimension_semantics<parallel>], iteration_bounds = array<i64: 1>, scalar_prefetch = 0 : i64, scratch_operands = 0 : i64, tpu.core_type = #tpu.core_type<tc>, window_params = [{transform_indices = @transform_0, window_bounds = array<i64: 16, 16>}, {transform_indices = @transform_1, window_bounds = array<i64: 16, 16>}, {pipeline_mode = #tpu.pipeline_mode<synchronous>, transform_indices = @transform_2, window_bounds = array<i64: 16, 128>}, {pipeline_mode = #tpu.pipeline_mode<synchronous>, transform_indices = @transform_3, window_bounds = array<i64: 16, 128>}, {pipeline_mode = #tpu.pipeline_mode<synchronous>, transform_indices = @transform_4, window_bounds = array<i64: 1, 128>}, {pipeline_mode = #tpu.pipeline_mode<synchronous>, transform_indices = @transform_5, window_bounds = array<i64: 128, 128>}, {pipeline_mode = #tpu.pipeline_mode<synchronous>, transform_indices = @transform_6, window_bounds = array<i64: 1, 128>}, {pipeline_mode = #tpu.pipeline_mode<synchronous>, transform_indices = @transform_7, window_bounds = array<i64: 128, 128>}, {pipeline_mode = #tpu.pipeline_mode<synchronous>, transform_indices = @transform_8, window_bounds = array<i64: 1, 128>}, {transform_indices = @transform_9, window_bounds = array<i64: 16, 128>}]} {
    %c0 = arith.constant 0 : index
    %c0_0 = arith.constant 0 : index
    %0 = vector.load %arg1[%c0, %c0_0] : memref<16x16xbf16, #tpu.memory_space<vmem>>, vector<16x16xbf16>
    %c0_1 = arith.constant 0 : index
    %c0_2 = arith.constant 0 : index
    %1 = vector.load %arg3[%c0_1, %c0_2] : memref<16x128xbf16, #tpu.memory_space<vmem>>, vector<16x128xbf16>
    %cst = arith.constant dense<0.000000e+00> : vector<16x128xf32>
    %2 = tpu.matmul %0, %1, %cst {dimension_numbers = #tpu.dot_dimension_numbers<[1], [0], [0], [1], [0, 0, 1, 1], [], []>} : vector<16x16xbf16>, vector<16x128xbf16>, vector<16x128xf32> -> vector<16x128xf32>
    %c0_3 = arith.constant 0 : index
    %c0_4 = arith.constant 0 : index
    %3 = vector.load %arg2[%c0_3, %c0_4] : memref<16x16xbf16, #tpu.memory_space<vmem>>, vector<16x16xbf16>
    %c0_5 = arith.constant 0 : index
    %c0_6 = arith.constant 0 : index
    %4 = vector.load %arg4[%c0_5, %c0_6] : memref<16x128xbf16, #tpu.memory_space<vmem>>, vector<16x128xbf16>
    %cst_7 = arith.constant dense<0.000000e+00> : vector<16x128xf32>
    %5 = tpu.matmul %3, %4, %cst_7 {dimension_numbers = #tpu.dot_dimension_numbers<[1], [0], [0], [1], [0, 0, 1, 1], [], []>} : vector<16x16xbf16>, vector<16x128xbf16>, vector<16x128xf32> -> vector<16x128xf32>
    %6 = arith.addf %2, %5 : vector<16x128xf32>
    %c0_8 = arith.constant 0 : index
    %c0_9 = arith.constant 0 : index
    %7 = vector.load %arg5[%c0_8, %c0_9] : memref<1x128xf32, #tpu.memory_space<vmem>>, vector<1x128xf32>
    %8 = vector.broadcast %7 : vector<1x128xf32> to vector<16x128xf32>
    %9 = arith.addf %6, %8 : vector<16x128xf32>
    %cst_10 = arith.constant 0.000000e+00 : f32
    %10 = vector.broadcast %cst_10 : f32 to vector<16x128xf32>
    %11 = arith.maximumf %9, %10 : vector<16x128xf32>
    %12 = arith.truncf %11 : vector<16x128xf32> to vector<16x128xbf16>
    %c0_11 = arith.constant 0 : index
    %c0_12 = arith.constant 0 : index
    %13 = vector.load %arg6[%c0_11, %c0_12] : memref<128x128xbf16, #tpu.memory_space<vmem>>, vector<128x128xbf16>
    %cst_13 = arith.constant dense<0.000000e+00> : vector<16x128xf32>
    %14 = tpu.matmul %12, %13, %cst_13 {dimension_numbers = #tpu.dot_dimension_numbers<[1], [0], [0], [1], [0, 0, 1, 1], [], []>} : vector<16x128xbf16>, vector<128x128xbf16>, vector<16x128xf32> -> vector<16x128xf32>
    %c0_14 = arith.constant 0 : index
    %c0_15 = arith.constant 0 : index
    %15 = vector.load %arg7[%c0_14, %c0_15] : memref<1x128xf32, #tpu.memory_space<vmem>>, vector<1x128xf32>
    %16 = vector.broadcast %15 : vector<1x128xf32> to vector<16x128xf32>
    %17 = arith.addf %14, %16 : vector<16x128xf32>
    %cst_16 = arith.constant 0.000000e+00 : f32
    %18 = vector.broadcast %cst_16 : f32 to vector<16x128xf32>
    %19 = arith.maximumf %17, %18 : vector<16x128xf32>
    %20 = arith.truncf %19 : vector<16x128xf32> to vector<16x128xbf16>
    %c0_17 = arith.constant 0 : index
    %c0_18 = arith.constant 0 : index
    %21 = vector.load %arg8[%c0_17, %c0_18] : memref<128x128xbf16, #tpu.memory_space<vmem>>, vector<128x128xbf16>
    %cst_19 = arith.constant dense<0.000000e+00> : vector<16x128xf32>
    %22 = tpu.matmul %20, %21, %cst_19 {dimension_numbers = #tpu.dot_dimension_numbers<[1], [0], [0], [1], [0, 0, 1, 1], [], []>} : vector<16x128xbf16>, vector<128x128xbf16>, vector<16x128xf32> -> vector<16x128xf32>
    %c0_20 = arith.constant 0 : index
    %c0_21 = arith.constant 0 : index
    %23 = vector.load %arg9[%c0_20, %c0_21] : memref<1x128xf32, #tpu.memory_space<vmem>>, vector<1x128xf32>
    %24 = vector.broadcast %23 : vector<1x128xf32> to vector<16x128xf32>
    %25 = arith.addf %22, %24 : vector<16x128xf32>
    %26 = math.tanh %25 : vector<16x128xf32>
    %c0_22 = arith.constant 0 : index
    %c0_23 = arith.constant 0 : index
    %27 = vector.load %arg10[%c0_22, %c0_23] : memref<16x128xf32, #tpu.memory_space<vmem>>, vector<16x128xf32>
    tpu.vector_store %arg10[%c0_22, %c0_23], %26 {strides = array<i32>} : memref<16x128xf32, #tpu.memory_space<vmem>>, vector<16x128xf32>,
    return
  }
  func.func @transform_0(%arg0: i32) -> (i32, i32) {
    %c0_i32 = arith.constant 0 : i32
    %c0_i32_0 = arith.constant 0 : i32
    return %arg0, %c0_i32 : i32, i32
  }
  func.func @transform_1(%arg0: i32) -> (i32, i32) {
    %c0_i32 = arith.constant 0 : i32
    %c0_i32_0 = arith.constant 0 : i32
    return %arg0, %c0_i32 : i32, i32
  }
  func.func @transform_2(%arg0: i32) -> (i32, i32) {
    %c0_i32 = arith.constant 0 : i32
    %c0_i32_0 = arith.constant 0 : i32
    %c0_i32_1 = arith.constant 0 : i32
    return %c0_i32, %c0_i32_0 : i32, i32
  }
  func.func @transform_3(%arg0: i32) -> (i32, i32) {
    %c0_i32 = arith.constant 0 : i32
    %c0_i32_0 = arith.constant 0 : i32
    %c0_i32_1 = arith.constant 0 : i32
    return %c0_i32, %c0_i32_0 : i32, i32
  }
  func.func @transform_4(%arg0: i32) -> (i32, i32) {
    %c0_i32 = arith.constant 0 : i32
    %c0_i32_0 = arith.constant 0 : i32
    %c0_i32_1 = arith.constant 0 : i32
    return %c0_i32, %c0_i32_0 : i32, i32
  }
  func.func @transform_5(%arg0: i32) -> (i32, i32) {
    %c0_i32 = arith.constant 0 : i32
    %c0_i32_0 = arith.constant 0 : i32
    %c0_i32_1 = arith.constant 0 : i32
    return %c0_i32, %c0_i32_0 : i32, i32
  }
  func.func @transform_6(%arg0: i32) -> (i32, i32) {
    %c0_i32 = arith.constant 0 : i32
    %c0_i32_0 = arith.constant 0 : i32
    %c0_i32_1 = arith.constant 0 : i32
    return %c0_i32, %c0_i32_0 : i32, i32
  }
  func.func @transform_7(%arg0: i32) -> (i32, i32) {
    %c0_i32 = arith.constant 0 : i32
    %c0_i32_0 = arith.constant 0 : i32
    %c0_i32_1 = arith.constant 0 : i32
    return %c0_i32, %c0_i32_0 : i32, i32
  }
  func.func @transform_8(%arg0: i32) -> (i32, i32) {
    %c0_i32 = arith.constant 0 : i32
    %c0_i32_0 = arith.constant 0 : i32
    %c0_i32_1 = arith.constant 0 : i32
    return %c0_i32, %c0_i32_0 : i32, i32
  }
  func.func @transform_9(%arg0: i32) -> (i32, i32) {
    %c0_i32 = arith.constant 0 : i32
    %c0_i32_0 = arith.constant 0 : i32
    return %arg0, %c0_i32 : i32, i32
  }
}

</mosaic_0001>

<bundles_post_ra>
// kernel: tpu_custom_call.1
= control target key start
LH: loop header
LB: loop body
LE: loop exit
PB: predicated region body
PF: predicated region fallthrough
CT: control target
= control target key end

     0   :  { %14 = vsyncpa [#allocation3], 0  ;;  %s921_s0 = inlined_call_operand.hbm [shape: bf16[16,16], index: 0, kind: input, shape index: {}]   ;;  %s922_s1 = inlined_call_operand.hbm [shape: bf16[16,16], index: 1, kind: input, shape index: {}]   ;;  %s923_s2 = inlined_call_operand.hbm [shape: bf16[16,128], index: 2, kind: input, shape index: {}]   ;;  %s924_s3 = inlined_call_operand.hbm [shape: bf16[16,128], index: 3, kind: input, shape index: {}]   ;;  %s925_s4 = inlined_call_operand.vmem [shape: f32[1,128], index: 4, kind: input, shape index: {}]   ;;  %s926_s5 = inlined_call_operand.hbm [shape: bf16[128,128], index: 5, kind: input, shape index: {}]   ;;  %s927_s6 = inlined_call_operand.vmem [shape: f32[1,128], index: 6, kind: input, shape index: {}]   ;;  %s928_s7 = inlined_call_operand.hbm [shape: bf16[128,128], index: 7, kind: input, shape index: {}]   ;;  %s929_s8 = inlined_call_operand.vmem [shape: f32[1,128], index: 8, kind: input, shape index: {}]   ;;  %s930_s9 = inlined_call_operand.hbm [shape: f32[16,128], index: 9, kind: output, shape index: {}]  }
   0x1   :  { %15 = vsyncpa [#allocation6], 0 }
   0x2   :  { %16 = vsyncpa [#allocation9], 0 }
   0x3   :  { %17 = vsyncpa [#allocation12], 0 }
   0x4   :  { %18 = vsyncpa [#allocation4], 0  ;;  %s784_s30 = smov [#allocation5]   ;;  %s785_s11 = smov [#allocation8]  }
   0x5   :  { %s36_s10 = sshll.u32 %s784_s30, 4  ;;  %s60_s12 = sshll.u32 %s785_s11, 4  ;;  %s37_s10 = int_to_ptr.vmem [resolvable:$true] %s36_s10  ;;  %s61_s12 = int_to_ptr.vmem [resolvable:$true] %s60_s12 }
   0x6   :  { %s642_s13 = scalar_lea.vmem %s37_s10, 128  ;;  %p647_p1 = scmp.lt.s32.totalorder %s37_s10, %s37_s10 }
   0x7   :  { %p643_p0 = scmp.ne.s32.totalorder %s37_s10, %s642_s13  ;;  %p648_p2 = scmp.lt.s32.totalorder %s642_s13, %s642_s13 }
   0x9   :  { %p649_p3 = por %p648_p2, %p647_p1 }
   0xb   :  { %p650_p4 = pnand %p649_p3, %p643_p0 }
   0xd   :  { %653 = shalt.err (!%p650_p4)
}
   0xe   :  { %s786_s14 = smov 64   ;;  %s787_s15 = smov 4  }
   0xf   :  { %42 = dma.hbm_to_vmem [thread:$0]  %s922_s1, 128, %s37_s10, [#allocation6], %s786_s14, %s786_s14, %s787_s15  }
  0x10   :  { %s662_s18 = scalar_lea.vmem %s61_s12, 128  ;;  %p667_p6 = scmp.lt.s32.totalorder %s61_s12, %s61_s12 }
  0x11   :  { %p663_p5 = scmp.ne.s32.totalorder %s61_s12, %s662_s18  ;;  %p668_p7 = scmp.lt.s32.totalorder %s662_s18, %s662_s18 }
  0x13   :  { %p669_p8 = por %p668_p7, %p667_p6 }
  0x15   :  { %p670_p9 = pnand %p669_p8, %p663_p5 }
  0x17   :  { %673 = shalt.err (!%p670_p9)
}
  0x18   :  { %66 = dma.hbm_to_vmem [thread:$0]  %s924_s3, 128, %s61_s12, [#allocation9], %s786_s14, %s786_s14, %s787_s15  }
  0x19   :  { %s788_s21 = smov [#allocation2]   ;;  %s789_s23 = smov [#allocation7]  }
  0x1a   :  { %s24_s22 = sshll.u32 %s788_s21, 4  ;;  %s48_s24 = sshll.u32 %s789_s23, 4  ;;  %s25_s22 = int_to_ptr.vmem [resolvable:$true] %s24_s22  ;;  %s49_s24 = int_to_ptr.vmem [resolvable:$true] %s48_s24 }
  0x1b   :  { %s682_s1 = scalar_lea.vmem %s25_s22, 128  ;;  %p687_p11 = scmp.lt.s32.totalorder %s25_s22, %s25_s22 }
  0x1c   :  { %p683_p10 = scmp.ne.s32.totalorder %s25_s22, %s682_s1  ;;  %p688_p12 = scmp.lt.s32.totalorder %s682_s1, %s682_s1 }
  0x1e   :  { %p689_p13 = por %p688_p12, %p687_p11 }
  0x20   :  { %p690_p0 = pnand %p689_p13, %p683_p10 }
  0x22   :  { %693 = shalt.err (!%p690_p0)
}
  0x23   :  { %30 = dma.hbm_to_vmem [thread:$0]  %s921_s0, 128, %s25_s22, [#allocation3], %s786_s14, %s786_s14, %s787_s15  }
  0x24   :  { %s702_s3 = scalar_lea.vmem %s49_s24, 128  ;;  %p707_p2 = scmp.lt.s32.totalorder %s49_s24, %s49_s24 }
  0x25   :  { %p703_p1 = scmp.ne.s32.totalorder %s49_s24, %s702_s3  ;;  %p708_p3 = scmp.lt.s32.totalorder %s702_s3, %s702_s3 }
  0x27   :  { %p709_p4 = por %p708_p3, %p707_p2 }
  0x29   :  { %p710_p5 = pnand %p709_p4, %p703_p1 }
  0x2b   :  { %713 = shalt.err (!%p710_p5)
}
  0x2c   :  { %54 = dma.hbm_to_vmem [thread:$0]  %s923_s2, 128, %s49_s24, [#allocation6], %s786_s14, %s786_s14, %s787_s15  }
  0x2d   :  { %s790_s29 = smov [#allocation10]   ;;  %s791_s10 = smov [#allocation11]  }
  0x2e   :  { %s74_s30 = sshll.u32 %s790_s29, 4  ;;  %s88_s11 = sshll.u32 %s791_s10, 4  ;;  %s75_s30 = int_to_ptr.vmem [resolvable:$true] %s74_s30  ;;  %s89_s11 = int_to_ptr.vmem [resolvable:$true] %s88_s11 }
  0x2f   :  { %s722_s0 = scalar_lea.vmem %s75_s30, 1024  ;;  %p727_p7 = scmp.lt.s32.totalorder %s75_s30, %s75_s30 }
  0x30   :  { %p723_p6 = scmp.ne.s32.totalorder %s75_s30, %s722_s0  ;;  %p728_p8 = scmp.lt.s32.totalorder %s722_s0, %s722_s0 }
  0x32   :  { %p729_p9 = por %p728_p8, %p727_p7 }
  0x34   :  { %p730_p10 = pnand %p729_p9, %p723_p6 }
  0x36   :  { %733 = shalt.err (!%p730_p10)
}
  0x37   :  { %80 = dma.hbm_to_vmem [thread:$0]  %s926_s5, 1024, %s75_s30, [#allocation9], %s786_s14, %s786_s14, %s787_s15  }
  0x38   :  { %s742_s2 = scalar_lea.vmem %s89_s11, 1024  ;;  %p747_p12 = scmp.lt.s32.totalorder %s89_s11, %s89_s11 }
  0x39   :  { %p743_p11 = scmp.ne.s32.totalorder %s89_s11, %s742_s2  ;;  %p748_p13 = scmp.lt.s32.totalorder %s742_s2, %s742_s2 }
  0x3b   :  { %p749_p0 = por %p748_p13, %p747_p12 }
  0x3d   :  { %p750_p1 = pnand %p749_p0, %p743_p11 }
  0x3f   :  { %753 = shalt.err (!%p750_p1)
}
  0x40   :  { %94 = dma.hbm_to_vmem [thread:$0]  %s928_s7, 1024, %s89_s11, [#allocation12], %s786_s14, %s786_s14, %s787_s15  }
  0x41   :  { %774 = dma.done.wait [#allocation3], 128  }
  0x42   :  { %775 = vsyncadd [#allocation3], 4294967168 }
  0x43   :  { %776 = dma.done.wait [#allocation6], 256  }
  0x44   :  { %777 = vsyncadd [#allocation6], 4294967040 }
  0x45   :  { %778 = dma.done.wait [#allocation9], 1152  }
  0x46   :  { %779 = vsyncadd [#allocation9], 4294966144 }
  0x47   :  { %780 = dma.done.wait [#allocation12], 1024  }
  0x48   :  { %781 = vsyncadd [#allocation12], 4294966272  ;;  %v792_v0 = vmov 0.0   ;;  %vm793_vm0 = vmmov 0   ;;  %v610_v1 = vld [vmem:[#allocation8] sm:$0xff]   ;;  %v611_v2 = vld [vmem:[#allocation7] sm:$0xff]  }
  0x49   :  { %545 = vmatprep.subr.bf16.mxu0 %v792_v0  ;;  %551 = vmatprep.subr.bf16.mxu1 %v792_v0  ;;  %v612_v3 = vld [vmem:[#allocation5] sm:$0xff]   ;;  %vm135_vm1 = vcmask 130048   ;;  %v613_v4 = vld [vmem:[#allocation2] sm:$0xff]   ;;  %v614_v5 = vld [vmem:[#allocation10 + $0x38] sm:$0xff]  }
  0x4a   :  { %547 = vmatprep.mubr.msk.bf16.mxu0 %vm793_vm0, %v792_v0  ;;  %553 = vmatprep.mubr.msk.bf16.mxu1 %vm793_vm0, %v792_v0  ;;  %v615_v6 = vld [vmem:[#allocation10 + $0x30] sm:$0xff]   ;;  %v616_v7 = vld [vmem:[#allocation10 + $0x28] sm:$0xff]   ;;  %v617_v8 = vld [vmem:[#allocation10 + $0x20] sm:$0xff]  }
  0x4b   :  { %546 = vmatpush3.bf16.msra.mxu0 %v610_v1  ;;  %552 = vmatpush3.bf16.msra.mxu1 %v611_v2  ;;  %v618_v9 = vld [vmem:[#allocation10 + $0x18] sm:$0xff]   ;;  %v619_v10 = vld [vmem:[#allocation10 + $0x10] sm:$0xff]   ;;  %v620_v11 = vld [vmem:[#allocation10 + $0x8] sm:$0xff]  }
  0x4c   :  { %557 = vmatprep.subr.bf16.mxu0 %v792_v0  ;;  %577 = vmatprep.subr.bf16.mxu1 %v792_v0  ;;  %v621_v12 = vld [vmem:[#allocation10] sm:$0xff]   ;;  %v622_v13 = vld [vmem:[#allocation11 + $0x38] sm:$0xff]   ;;  %v623_v14 = vld [vmem:[#allocation11 + $0x30] sm:$0xff]  }
  0x4d   :  { %v624_v15 = vld [vmem:[#allocation11 + $0x28] sm:$0xff]   ;;  %v625_v16 = vld [vmem:[#allocation11 + $0x20] sm:$0xff]   ;;  %v626_v17 = vld [vmem:[#allocation11 + $0x18] sm:$0xff]  }
  0x4e   :  { %548 = vmatmul.mubr.msk.bf16.vlgmr.msra.gmra.mxu0 %vm135_vm1, %v612_v3  ;;  %554 = vmatmul.mubr.msk.bf16.vlgmr.msra.gmra.mxu1 %vm135_vm1, %v613_v4  ;;  %v504_v22 = vld [vmem:[%s925_s4] ss:$0 sm:$0xff]  ;;  %v627_v34 = vld [vmem:[#allocation11 + $0x10] sm:$0xff]   ;;  %v628_v35 = vld [vmem:[#allocation11 + $0x8] sm:$0xff]  }
  0x4f   :  { %558 = vmatpush3.bf16.msra.mxu0 %v614_v5  ;;  %573 = vmatprep.mubr.msk.bf16.mxu0 %vm793_vm0, %v792_v0  ;;  %v629_v36 = vld [vmem:[#allocation11] sm:$0xff]  }
  0x50   :  { %559 = vmatprep.subr.bf16.mxu0 %v792_v0  ;;  %593 = vmatprep.mubr.msk.bf16.mxu1 %vm793_vm0, %v792_v0  ;;  %v505_v37 = vld [vmem:[%s927_s6] ss:$0 sm:$0xff]  ;;  %s794_s6 = smov [#allocation13]  }
  0x51   :  { %578 = vmatpush3.bf16.msra.mxu1 %v622_v13  ;;  %v514_v47 = vld [vmem:[%s929_s8] ss:$0 sm:$0xff]  ;;  %s483_s19 = sshll.u32 %s794_s6, 4  ;;  %s484_s19 = int_to_ptr.vmem [resolvable:$true] %s483_s19 }
  0x52   :  { %579 = vmatprep.subr.bf16.mxu1 %v792_v0  ;;  %s754_s20 = scalar_lea.vmem %s484_s19, 256  ;;  %p759_p3 = scmp.lt.s32.totalorder %s484_s19, %s484_s19 }
  0x53   :  { %560 = vmatpush3.bf16.msra.mxu0 %v615_v6  ;;  %p755_p2 = scmp.ne.s32.totalorder %s484_s19, %s754_s20  ;;  %p760_p4 = scmp.lt.s32.totalorder %s754_s20, %s754_s20 }
  0x54   :  { %561 = vmatprep.subr.bf16.mxu0 %v792_v0 }
  0x55   :  { %580 = vmatpush3.bf16.msra.mxu1 %v623_v14  ;;  %p761_p5 = por %p760_p4, %p759_p3 }
  0x56   :  { %581 = vmatprep.subr.bf16.mxu1 %v792_v0 }
  0x57   :  { %562 = vmatpush3.bf16.msra.mxu0 %v616_v7  ;;  %p762_p6 = pnand %p761_p5, %p755_p2 }
  0x58   :  { %563 = vmatprep.subr.bf16.mxu0 %v792_v0 }
  0x59   :  { %582 = vmatpush3.bf16.msra.mxu1 %v624_v15 }
  0x5a   :  { %583 = vmatprep.subr.bf16.mxu1 %v792_v0 }
  0x5b   :  { %564 = vmatpush3.bf16.msra.mxu0 %v617_v8 }
  0x5c   :  { %565 = vmatprep.subr.bf16.mxu0 %v792_v0 }
  0x5d   :  { %584 = vmatpush3.bf16.msra.mxu1 %v625_v16 }
  0x5e   :  { %585 = vmatprep.subr.bf16.mxu1 %v792_v0 }
  0x5f   :  { %566 = vmatpush3.bf16.msra.mxu0 %v618_v9 }
  0x60   :  { %567 = vmatprep.subr.bf16.mxu0 %v792_v0 }
  0x61   :  { %586 = vmatpush3.bf16.msra.mxu1 %v626_v17 }
  0x62   :  { %587 = vmatprep.subr.bf16.mxu1 %v792_v0 }
  0x63   :  { %568 = vmatpush3.bf16.msra.mxu0 %v619_v10 }
  0x64   :  { %569 = vmatprep.subr.bf16.mxu0 %v792_v0 }
  0x65   :  { %588 = vmatpush3.bf16.msra.mxu1 %v627_v34 }
  0x66   :  { %589 = vmatprep.subr.bf16.mxu1 %v792_v0 }
  0x67   :  { %570 = vmatpush3.bf16.msra.mxu0 %v620_v11 }
  0x68   :  { %571 = vmatprep.subr.bf16.mxu0 %v792_v0 }
  0x69   :  { %590 = vmatpush3.bf16.msra.mxu1 %v628_v35 }
  0x6a   :  { %591 = vmatprep.subr.bf16.mxu1 %v792_v0 }
  0x6b   :  { %572 = vmatpush3.bf16.msra.mxu0 %v621_v12 }
  0x6d   :  { %592 = vmatpush3.bf16.msra.mxu1 %v629_v36 }
 0x10e   :  { %v173_v18 = vpop.f32.mrf.mxu0  ;;  %v228_v19 = vpop.f32.mrf.mxu1 }
 0x10f   :  { %v229_v20 = vadd.f32 %v228_v19, %v173_v18 }
 0x110   :  { %v549_v21 = vpop.f32.mrf.mxu0  ;;  %v555_v23 = vpop.f32.mrf.mxu1 }
 0x111   :  { %v242_v26 = vadd.f32 %v504_v22, %v229_v20 }
 0x112   :  { %v176_v24 = vpop.f32.mrf.mxu0  ;;  %v231_v25 = vpop.f32.mrf.mxu1 }
 0x113   :  { %v232_v27 = vadd.f32 %v231_v25, %v176_v24  ;;  %v244_v31 = vmax.f32 %v242_v26, 0.0 }
 0x114   :  { %v550_v28 = vpop.f32.mrf.mxu0  ;;  %v556_v29 = vpop.f32.mrf.mxu1 }
 0x115   :  { %v243_v30 = vadd.f32 %v504_v22, %v232_v27 }
 0x117   :  { %v245_v32 = vmax.f32 %v243_v30, 0.0 }
 0x119   :  { %v246_v33 = vpack.c.bf16 %v245_v32, %v244_v31 }
 0x11b   :  { %574 = vmatmul.mubr.bf16.vlgmr.msra.gmra.mxu0 %v246_v33 }
 0x1db   :  { %v352_v38 = vpop.f32.mrf.mxu0 }
 0x1dc   :  { %v353_v40 = vadd.f32 %v505_v37, %v352_v38 }
 0x1dd   :  { %v575_v39 = vpop.f32.mrf.mxu0 }
 0x1de   :  { %v359_v44 = vmax.f32 %v353_v40, 0.0 }
 0x1df   :  { %v355_v41 = vpop.f32.mrf.mxu0 }
 0x1e0   :  { %v356_v42 = vadd.f32 %v505_v37, %v355_v41 }
 0x1e1   :  { %v576_v43 = vpop.f32.mrf.mxu0 }
 0x1e2   :  { %v360_v45 = vmax.f32 %v356_v42, 0.0 }
 0x1e4   :  { %v361_v46 = vpack.c.bf16 %v360_v45, %v359_v44 }
 0x1e6   :  { %594 = vmatmul.mubr.bf16.vlgmr.msra.gmra.mxu1 %v361_v46 }
 0x2a6   :  { %v467_v48 = vpop.f32.mrf.mxu1 }
 0x2a7   :  { %v468_v49 = vadd.f32 %v514_v47, %v467_v48 }
 0x2a8   :  { %v595_v50 = vpop.f32.mrf.mxu1 }
 0x2a9   :  { %630 = vtanh.f32 %v468_v49 }
 0x2aa   :  { %v470_v51 = vpop.f32.mrf.mxu1 }
 0x2ab   :  { %v471_v52 = vadd.f32 %v514_v47, %v470_v51 }
 0x2ac   :  { %v596_v53 = vpop.f32.mrf.mxu1 }
 0x2ad   :  { %632 = vtanh.f32 %v471_v52 }
 0x2b6   :  { %v631_v54 = vpop.eup %630 }
 0x2b7   :  { %476 = vst [vmem:[#allocation13] sm:$0xff] %v631_v54 }
 0x2ba   :  { %v633_v55 = vpop.eup %632 }
 0x2bb   :  { %477 = vst [vmem:[#allocation13 + $0x8] sm:$0xff] %v633_v55 }
 0x2bc   :  { %765 = shalt.err (!%p762_p6)
}
 0x2bd   :  { %s795_s8 = smov 128   ;;  %s796_s21 = smov 8  }
 0x2be   :  { %489 = dma.vmem_to_hbm [thread:$0]  %s484_s19, 256, %s930_s9, [#allocation4], %s795_s8, %s795_s8, %s796_s21  }
 0x2bf   :  { %782 = dma.done.wait [#allocation4], 256  }
 0x2c0   :  { %783 = vsyncadd [#allocation4], 4294967040 }
 0x2c1   :  { %493 = vsyncpa [#allocation3], 1 }
 0x2c2   :  { %494 = vsyncpa [#allocation6], 1 }
 0x2c3   :  { %495 = vsyncpa [#allocation9], 1 }
 0x2c4   :  { %496 = vsyncpa [#allocation12], 1 }
 0x2c5   :  { %497 = vsyncpa [#allocation4], 1 }

// kernel: tpu_custom_call.1
= control target key start
LH: loop header
LB: loop body
LE: loop exit
PB: predicated region body
PF: predicated region fallthrough
CT: control target
= control target key end

     0   :  { %14 = vsyncpa [#allocation3], 0  ;;  %s921_s0 = inlined_call_operand.hbm [shape: bf16[16,16], index: 0, kind: input, shape index: {}]   ;;  %s922_s1 = inlined_call_operand.hbm [shape: bf16[16,16], index: 1, kind: input, shape index: {}]   ;;  %s923_s2 = inlined_call_operand.hbm [shape: bf16[16,128], index: 2, kind: input, shape index: {}]   ;;  %s924_s3 = inlined_call_operand.hbm [shape: bf16[16,128], index: 3, kind: input, shape index: {}]   ;;  %s925_s4 = inlined_call_operand.vmem [shape: f32[1,128], index: 4, kind: input, shape index: {}]   ;;  %s926_s5 = inlined_call_operand.hbm [shape: bf16[128,128], index: 5, kind: input, shape index: {}]   ;;  %s927_s6 = inlined_call_operand.vmem [shape: f32[1,128], index: 6, kind: input, shape index: {}]   ;;  %s928_s7 = inlined_call_operand.hbm [shape: bf16[128,128], index: 7, kind: input, shape index: {}]   ;;  %s929_s8 = inlined_call_operand.vmem [shape: f32[1,128], index: 8, kind: input, shape index: {}]   ;;  %s930_s9 = inlined_call_operand.hbm [shape: f32[16,128], index: 9, kind: output, shape index: {}]  }
   0x1   :  { %15 = vsyncpa [#allocation6], 0 }
   0x2   :  { %16 = vsyncpa [#allocation9], 0 }
   0x3   :  { %17 = vsyncpa [#allocation12], 0 }
   0x4   :  { %18 = vsyncpa [#allocation4], 0  ;;  %s784_s30 = smov [#allocation5]   ;;  %s785_s11 = smov [#allocation8]  }
   0x5   :  { %s36_s10 = sshll.u32 %s784_s30, 4  ;;  %s60_s12 = sshll.u32 %s785_s11, 4  ;;  %s37_s10 = int_to_ptr.vmem [resolvable:$true] %s36_s10  ;;  %s61_s12 = int_to_ptr.vmem [resolvable:$true] %s60_s12 }
   0x6   :  { %s642_s13 = scalar_lea.vmem %s37_s10, 128  ;;  %p647_p1 = scmp.lt.s32.totalorder %s37_s10, %s37_s10 }
   0x7   :  { %p643_p0 = scmp.ne.s32.totalorder %s37_s10, %s642_s13  ;;  %p648_p2 = scmp.lt.s32.totalorder %s642_s13, %s642_s13 }
   0x9   :  { %p649_p3 = por %p648_p2, %p647_p1 }
   0xb   :  { %p650_p4 = pnand %p649_p3, %p643_p0 }
   0xd   :  { %653 = shalt.err (!%p650_p4)
}
   0xe   :  { %s786_s14 = smov 64   ;;  %s787_s15 = smov 4  }
   0xf   :  { %42 = dma.hbm_to_vmem [thread:$0]  %s922_s1, 128, %s37_s10, [#allocation6], %s786_s14, %s786_s14, %s787_s15  }
  0x10   :  { %s662_s18 = scalar_lea.vmem %s61_s12, 128  ;;  %p667_p6 = scmp.lt.s32.totalorder %s61_s12, %s61_s12 }
  0x11   :  { %p663_p5 = scmp.ne.s32.totalorder %s61_s12, %s662_s18  ;;  %p668_p7 = scmp.lt.s32.totalorder %s662_s18, %s662_s18 }
  0x13   :  { %p669_p8 = por %p668_p7, %p667_p6 }
  0x15   :  { %p670_p9 = pnand %p669_p8, %p663_p5 }
  0x17   :  { %673 = shalt.err (!%p670_p9)
}
  0x18   :  { %66 = dma.hbm_to_vmem [thread:$0]  %s924_s3, 128, %s61_s12, [#allocation9], %s786_s14, %s786_s14, %s787_s15  }
  0x19   :  { %s788_s21 = smov [#allocation2]   ;;  %s789_s23 = smov [#allocation7]  }
  0x1a   :  { %s24_s22 = sshll.u32 %s788_s21, 4  ;;  %s48_s24 = sshll.u32 %s789_s23, 4  ;;  %s25_s22 = int_to_ptr.vmem [resolvable:$true] %s24_s22  ;;  %s49_s24 = int_to_ptr.vmem [resolvable:$true] %s48_s24 }
  0x1b   :  { %s682_s1 = scalar_lea.vmem %s25_s22, 128  ;;  %p687_p11 = scmp.lt.s32.totalorder %s25_s22, %s25_s22 }
  0x1c   :  { %p683_p10 = scmp.ne.s32.totalorder %s25_s22, %s682_s1  ;;  %p688_p12 = scmp.lt.s32.totalorder %s682_s1, %s682_s1 }
  0x1e   :  { %p689_p13 = por %p688_p12, %p687_p11 }
  0x20   :  { %p690_p0 = pnand %p689_p13, %p683_p10 }
  0x22   :  { %693 = shalt.err (!%p690_p0)
}
  0x23   :  { %30 = dma.hbm_to_vmem [thread:$0]  %s921_s0, 128, %s25_s22, [#allocation3], %s786_s14, %s786_s14, %s787_s15  }
  0x24   :  { %s702_s3 = scalar_lea.vmem %s49_s24, 128  ;;  %p707_p2 = scmp.lt.s32.totalorder %s49_s24, %s49_s24 }
  0x25   :  { %p703_p1 = scmp.ne.s32.totalorder %s49_s24, %s702_s3  ;;  %p708_p3 = scmp.lt.s32.totalorder %s702_s3, %s702_s3 }
  0x27   :  { %p709_p4 = por %p708_p3, %p707_p2 }
  0x29   :  { %p710_p5 = pnand %p709_p4, %p703_p1 }
  0x2b   :  { %713 = shalt.err (!%p710_p5)
}
  0x2c   :  { %54 = dma.hbm_to_vmem [thread:$0]  %s923_s2, 128, %s49_s24, [#allocation6], %s786_s14, %s786_s14, %s787_s15  }
  0x2d   :  { %s790_s29 = smov [#allocation10]   ;;  %s791_s10 = smov [#allocation11]  }
  0x2e   :  { %s74_s30 = sshll.u32 %s790_s29, 4  ;;  %s88_s11 = sshll.u32 %s791_s10, 4  ;;  %s75_s30 = int_to_ptr.vmem [resolvable:$true] %s74_s30  ;;  %s89_s11 = int_to_ptr.vmem [resolvable:$true] %s88_s11 }
  0x2f   :  { %s722_s0 = scalar_lea.vmem %s75_s30, 1024  ;;  %p727_p7 = scmp.lt.s32.totalorder %s75_s30, %s75_s30 }
  0x30   :  { %p723_p6 = scmp.ne.s32.totalorder %s75_s30, %s722_s0  ;;  %p728_p8 = scmp.lt.s32.totalorder %s722_s0, %s722_s0 }
  0x32   :  { %p729_p9 = por %p728_p8, %p727_p7 }
  0x34   :  { %p730_p10 = pnand %p729_p9, %p723_p6 }
  0x36   :  { %733 = shalt.err (!%p730_p10)
}
  0x37   :  { %80 = dma.hbm_to_vmem [thread:$0]  %s926_s5, 1024, %s75_s30, [#allocation9], %s786_s14, %s786_s14, %s787_s15  }
  0x38   :  { %s742_s2 = scalar_lea.vmem %s89_s11, 1024  ;;  %p747_p12 = scmp.lt.s32.totalorder %s89_s11, %s89_s11 }
  0x39   :  { %p743_p11 = scmp.ne.s32.totalorder %s89_s11, %s742_s2  ;;  %p748_p13 = scmp.lt.s32.totalorder %s742_s2, %s742_s2 }
  0x3b   :  { %p749_p0 = por %p748_p13, %p747_p12 }
  0x3d   :  { %p750_p1 = pnand %p749_p0, %p743_p11 }
  0x3f   :  { %753 = shalt.err (!%p750_p1)
}
  0x40   :  { %94 = dma.hbm_to_vmem [thread:$0]  %s928_s7, 1024, %s89_s11, [#allocation12], %s786_s14, %s786_s14, %s787_s15  }
  0x41   :  { %774 = dma.done.wait [#allocation3], 128  }
  0x42   :  { %775 = vsyncadd [#allocation3], 4294967168 }
  0x43   :  { %776 = dma.done.wait [#allocation6], 256  }
  0x44   :  { %777 = vsyncadd [#allocation6], 4294967040 }
  0x45   :  { %778 = dma.done.wait [#allocation9], 1152  }
  0x46   :  { %779 = vsyncadd [#allocation9], 4294966144 }
  0x47   :  { %780 = dma.done.wait [#allocation12], 1024  }
  0x48   :  { %781 = vsyncadd [#allocation12], 4294966272  ;;  %v792_v0 = vmov 0.0   ;;  %vm793_vm0 = vmmov 0   ;;  %v610_v1 = vld [vmem:[#allocation8] sm:$0xff]   ;;  %v611_v2 = vld [vmem:[#allocation7] sm:$0xff]  }
  0x49   :  { %545 = vmatprep.subr.bf16.mxu0 %v792_v0  ;;  %551 = vmatprep.subr.bf16.mxu1 %v792_v0  ;;  %v612_v3 = vld [vmem:[#allocation5] sm:$0xff]   ;;  %vm135_vm1 = vcmask 130048   ;;  %v613_v4 = vld [vmem:[#allocation2] sm:$0xff]   ;;  %v614_v5 = vld [vmem:[#allocation10 + $0x38] sm:$0xff]  }
  0x4a   :  { %547 = vmatprep.mubr.msk.bf16.mxu0 %vm793_vm0, %v792_v0  ;;  %553 = vmatprep.mubr.msk.bf16.mxu1 %vm793_vm0, %v792_v0  ;;  %v615_v6 = vld [vmem:[#allocation10 + $0x30] sm:$0xff]   ;;  %v616_v7 = vld [vmem:[#allocation10 + $0x28] sm:$0xff]   ;;  %v617_v8 = vld [vmem:[#allocation10 + $0x20] sm:$0xff]  }
  0x4b   :  { %546 = vmatpush3.bf16.msra.mxu0 %v610_v1  ;;  %552 = vmatpush3.bf16.msra.mxu1 %v611_v2  ;;  %v618_v9 = vld [vmem:[#allocation10 + $0x18] sm:$0xff]   ;;  %v619_v10 = vld [vmem:[#allocation10 + $0x10] sm:$0xff]   ;;  %v620_v11 = vld [vmem:[#allocation10 + $0x8] sm:$0xff]  }
  0x4c   :  { %557 = vmatprep.subr.bf16.mxu0 %v792_v0  ;;  %577 = vmatprep.subr.bf16.mxu1 %v792_v0  ;;  %v621_v12 = vld [vmem:[#allocation10] sm:$0xff]   ;;  %v622_v13 = vld [vmem:[#allocation11 + $0x38] sm:$0xff]   ;;  %v623_v14 = vld [vmem:[#allocation11 + $0x30] sm:$0xff]  }
  0x4d   :  { %v624_v15 = vld [vmem:[#allocation11 + $0x28] sm:$0xff]   ;;  %v625_v16 = vld [vmem:[#allocation11 + $0x20] sm:$0xff]   ;;  %v626_v17 = vld [vmem:[#allocation11 + $0x18] sm:$0xff]  }
  0x4e   :  { %548 = vmatmul.mubr.msk.bf16.vlgmr.msra.gmra.mxu0 %vm135_vm1, %v612_v3  ;;  %554 = vmatmul.mubr.msk.bf16.vlgmr.msra.gmra.mxu1 %vm135_vm1, %v613_v4  ;;  %v504_v22 = vld [vmem:[%s925_s4] ss:$0 sm:$0xff]  ;;  %v627_v34 = vld [vmem:[#allocation11 + $0x10] sm:$0xff]   ;;  %v628_v35 = vld [vmem:[#allocation11 + $0x8] sm:$0xff]  }
  0x4f   :  { %558 = vmatpush3.bf16.msra.mxu0 %v614_v5  ;;  %573 = vmatprep.mubr.msk.bf16.mxu0 %vm793_vm0, %v792_v0  ;;  %v629_v36 = vld [vmem:[#allocation11] sm:$0xff]  }
  0x50   :  { %559 = vmatprep.subr.bf16.mxu0 %v792_v0  ;;  %593 = vmatprep.mubr.msk.bf16.mxu1 %vm793_vm0, %v792_v0  ;;  %v505_v37 = vld [vmem:[%s927_s6] ss:$0 sm:$0xff]  ;;  %s794_s6 = smov [#allocation13]  }
  0x51   :  { %578 = vmatpush3.bf16.msra.mxu1 %v622_v13  ;;  %v514_v47 = vld [vmem:[%s929_s8] ss:$0 sm:$0xff]  ;;  %s483_s19 = sshll.u32 %s794_s6, 4  ;;  %s484_s19 = int_to_ptr.vmem [resolvable:$true] %s483_s19 }
  0x52   :  { %579 = vmatprep.subr.bf16.mxu1 %v792_v0  ;;  %s754_s20 = scalar_lea.vmem %s484_s19, 256  ;;  %p759_p3 = scmp.lt.s32.totalorder %s484_s19, %s484_s19 }
  0x53   :  { %560 = vmatpush3.bf16.msra.mxu0 %v615_v6  ;;  %p755_p2 = scmp.ne.s32.totalorder %s484_s19, %s754_s20  ;;  %p760_p4 = scmp.lt.s32.totalorder %s754_s20, %s754_s20 }
  0x54   :  { %561 = vmatprep.subr.bf16.mxu0 %v792_v0 }
  0x55   :  { %580 = vmatpush3.bf16.msra.mxu1 %v623_v14  ;;  %p761_p5 = por %p760_p4, %p759_p3 }
  0x56   :  { %581 = vmatprep.subr.bf16.mxu1 %v792_v0 }
  0x57   :  { %562 = vmatpush3.bf16.msra.mxu0 %v616_v7  ;;  %p762_p6 = pnand %p761_p5, %p755_p2 }
  0x58   :  { %563 = vmatprep.subr.bf16.mxu0 %v792_v0 }
  0x59   :  { %582 = vmatpush3.bf16.msra.mxu1 %v624_v15 }
  0x5a   :  { %583 = vmatprep.subr.bf16.mxu1 %v792_v0 }
  0x5b   :  { %564 = vmatpush3.bf16.msra.mxu0 %v617_v8 }
  0x5c   :  { %565 = vmatprep.subr.bf16.mxu0 %v792_v0 }
  0x5d   :  { %584 = vmatpush3.bf16.msra.mxu1 %v625_v16 }
  0x5e   :  { %585 = vmatprep.subr.bf16.mxu1 %v792_v0 }
  0x5f   :  { %566 = vmatpush3.bf16.msra.mxu0 %v618_v9 }
  0x60   :  { %567 = vmatprep.subr.bf16.mxu0 %v792_v0 }
  0x61   :  { %586 = vmatpush3.bf16.msra.mxu1 %v626_v17 }
  0x62   :  { %587 = vmatprep.subr.bf16.mxu1 %v792_v0 }
  0x63   :  { %568 = vmatpush3.bf16.msra.mxu0 %v619_v10 }
  0x64   :  { %569 = vmatprep.subr.bf16.mxu0 %v792_v0 }
  0x65   :  { %588 = vmatpush3.bf16.msra.mxu1 %v627_v34 }
  0x66   :  { %589 = vmatprep.subr.bf16.mxu1 %v792_v0 }
  0x67   :  { %570 = vmatpush3.bf16.msra.mxu0 %v620_v11 }
  0x68   :  { %571 = vmatprep.subr.bf16.mxu0 %v792_v0 }
  0x69   :  { %590 = vmatpush3.bf16.msra.mxu1 %v628_v35 }
  0x6a   :  { %591 = vmatprep.subr.bf16.mxu1 %v792_v0 }
  0x6b   :  { %572 = vmatpush3.bf16.msra.mxu0 %v621_v12 }
  0x6d   :  { %592 = vmatpush3.bf16.msra.mxu1 %v629_v36 }
 0x10e   :  { %v173_v18 = vpop.f32.mrf.mxu0  ;;  %v228_v19 = vpop.f32.mrf.mxu1 }
 0x10f   :  { %v229_v20 = vadd.f32 %v228_v19, %v173_v18 }
 0x110   :  { %v549_v21 = vpop.f32.mrf.mxu0  ;;  %v555_v23 = vpop.f32.mrf.mxu1 }
 0x111   :  { %v242_v26 = vadd.f32 %v504_v22, %v229_v20 }
 0x112   :  { %v176_v24 = vpop.f32.mrf.mxu0  ;;  %v231_v25 = vpop.f32.mrf.mxu1 }
 0x113   :  { %v232_v27 = vadd.f32 %v231_v25, %v176_v24  ;;  %v244_v31 = vmax.f32 %v242_v26, 0.0 }
 0x114   :  { %v550_v28 = vpop.f32.mrf.mxu0  ;;  %v556_v29 = vpop.f32.mrf.mxu1 }
 0x115   :  { %v243_v30 = vadd.f32 %v504_v22, %v232_v27 }
 0x117   :  { %v245_v32 = vmax.f32 %v243_v30, 0.0 }
 0x119   :  { %v246_v33 = vpack.c.bf16 %v245_v32, %v244_v31 }
 0x11b   :  { %574 = vmatmul.mubr.bf16.vlgmr.msra.gmra.mxu0 %v246_v33 }
 0x1db   :  { %v352_v38 = vpop.f32.mrf.mxu0 }
 0x1dc   :  { %v353_v40 = vadd.f32 %v505_v37, %v352_v38 }
 0x1dd   :  { %v575_v39 = vpop.f32.mrf.mxu0 }
 0x1de   :  { %v359_v44 = vmax.f32 %v353_v40, 0.0 }
 0x1df   :  { %v355_v41 = vpop.f32.mrf.mxu0 }
 0x1e0   :  { %v356_v42 = vadd.f32 %v505_v37, %v355_v41 }
 0x1e1   :  { %v576_v43 = vpop.f32.mrf.mxu0 }
 0x1e2   :  { %v360_v45 = vmax.f32 %v356_v42, 0.0 }
 0x1e4   :  { %v361_v46 = vpack.c.bf16 %v360_v45, %v359_v44 }
 0x1e6   :  { %594 = vmatmul.mubr.bf16.vlgmr.msra.gmra.mxu1 %v361_v46 }
 0x2a6   :  { %v467_v48 = vpop.f32.mrf.mxu1 }
 0x2a7   :  { %v468_v49 = vadd.f32 %v514_v47, %v467_v48 }
 0x2a8   :  { %v595_v50 = vpop.f32.mrf.mxu1 }
 0x2a9   :  { %630 = vtanh.f32 %v468_v49 }
 0x2aa   :  { %v470_v51 = vpop.f32.mrf.mxu1 }
 0x2ab   :  { %v471_v52 = vadd.f32 %v514_v47, %v470_v51 }
 0x2ac   :  { %v596_v53 = vpop.f32.mrf.mxu1 }
 0x2ad   :  { %632 = vtanh.f32 %v471_v52 }
 0x2b6   :  { %v631_v54 = vpop.eup %630 }
 0x2b7   :  { %476 = vst [vmem:[#allocation13] sm:$0xff] %v631_v54 }
 0x2ba   :  { %v633_v55 = vpop.eup %632 }
 0x2bb   :  { %477 = vst [vmem:[#allocation13 + $0x8] sm:$0xff] %v633_v55 }
 0x2bc   :  { %765 = shalt.err (!%p762_p6)
}
 0x2bd   :  { %s795_s8 = smov 128   ;;  %s796_s21 = smov 8  }
 0x2be   :  { %489 = dma.vmem_to_hbm [thread:$0]  %s484_s19, 256, %s930_s9, [#allocation4], %s795_s8, %s795_s8, %s796_s21  }
 0x2bf   :  { %782 = dma.done.wait [#allocation4], 256  }
 0x2c0   :  { %783 = vsyncadd [#allocation4], 4294967040 }
 0x2c1   :  { %493 = vsyncpa [#allocation3], 1 }
 0x2c2   :  { %494 = vsyncpa [#allocation6], 1 }
 0x2c3   :  { %495 = vsyncpa [#allocation9], 1 }
 0x2c4   :  { %496 = vsyncpa [#allocation12], 1 }
 0x2c5   :  { %497 = vsyncpa [#allocation4], 1 }

</bundles_post_ra>
